<compile_context>
chip_gen: v7x
topology: tpu7x:2x2x1
jax: 0.10.0
libtpu: 0.0.40
codegen_flags: <defaults>
</compile_context>

<pallas_src>
import functools

import jax
import jax.numpy as jnp
from jax import lax
from jax.experimental import pallas as pl
from jax.experimental.pallas import tpu as pltpu

# --- global recording lists, same as the PyTorch file ------------------------
hidden_state_attn = []
hidden_state_input = []


# --- Pallas kernel: fused QKV/O projections + causal flash attention + cosine --
def _flash_sdpa_cos_kernel(xq_ref, xkv_ref, w_ref, out_ref, cos_ref,
                           q_scr, m_scr, l_scr, acc_scr, oacc_scr,
                           *, tq, tkv, scale):
    # grid = (batch, q_tile, head, kv_tile); kv innermost, head next.
    qi = pl.program_id(1)
    h = pl.program_id(2)
    kj = pl.program_id(3)
    nh = pl.num_programs(2)
    nkv = pl.num_programs(3)

    # ---- reset the cross-head output accumulator once per (b, q_tile) -------
    @pl.when((h == 0) & (kj == 0))
    def _():
        oacc_scr[...] = jnp.zeros_like(oacc_scr)

    # ---- per (b, q_tile, head): project Q for this head, reset flash stats --
    @pl.when(kj == 0)
    def _():
        x_q = xq_ref[0]                            # (tq, D)  bf16
        q = jnp.dot(x_q, w_ref[0, 0],              # (D, dh)  bf16
                    preferred_element_type=jnp.float32)
        q_scr[...] = (q * scale).astype(q_scr.dtype)
        m_scr[...] = jnp.full_like(m_scr, -1e30)
        l_scr[...] = jnp.zeros_like(l_scr)
        acc_scr[...] = jnp.zeros_like(acc_scr)

    q_start = qi * tq
    kv_start = kj * tkv

    # ---- online softmax over this kv tile; skip fully-masked causal tiles ---
    @pl.when(kv_start <= q_start + (tq - 1))
    def _():
        x_kv = xkv_ref[0]                          # (tkv, D) bf16
        k = jnp.dot(x_kv, w_ref[1, 0],
                    preferred_element_type=jnp.float32).astype(x_kv.dtype)
        v = jnp.dot(x_kv, w_ref[2, 0],
                    preferred_element_type=jnp.float32).astype(x_kv.dtype)
        # contract last dims of Q and K directly (no explicit transpose)
        s = lax.dot_general(q_scr[...], k,
                            dimension_numbers=(((1,), (1,)), ((), ())),
                            preferred_element_type=jnp.float32)   # (tq, tkv)
        row = q_start + lax.broadcasted_iota(jnp.int32, (tq, tkv), 0)
        col = kv_start + lax.broadcasted_iota(jnp.int32, (tq, tkv), 1)
        s = jnp.where(row >= col, s, -1e30)

        m_prev = m_scr[...]
        m_new = jnp.maximum(m_prev, jnp.max(s, axis=-1, keepdims=True))
        alpha = jnp.exp(m_prev - m_new)
        p = jnp.exp(s - m_new)
        l_scr[...] = alpha * l_scr[...] + jnp.sum(p, axis=-1, keepdims=True)
        acc_scr[...] = alpha * acc_scr[...] + jnp.dot(
            p.astype(v.dtype), v, preferred_element_type=jnp.float32)
        m_scr[...] = m_new

    # ---- per-head finalize: fold this head's O-projection into the output ---
    @pl.when(kj == nkv - 1)
    def _():
        inv_l = pl.reciprocal(l_scr[...], approx=True)            # EUP slot
        head_out = (acc_scr[...] * inv_l).astype(w_ref.dtype)     # (tq, dh) bf16
        # w_ref[3, 0] is Wo_h^T with shape (D, dh); contract last dims.
        oacc_scr[...] += lax.dot_general(
            head_out, w_ref[3, 0],
            dimension_numbers=(((1,), (1,)), ((), ())),
            preferred_element_type=jnp.float32)                   # (tq, D)

    # ---- final write: attention output + per-token cosine similarity --------
    @pl.when((h == nh - 1) & (kj == nkv - 1))
    def _():
        out = oacc_scr[...]                                       # (tq, D) f32
        out_ref[0] = out.astype(out_ref.dtype)
        x_f32 = xq_ref[0].astype(jnp.float32)
        dot = jnp.sum(x_f32 * out, axis=-1, keepdims=True)        # (tq, 1)
        nx2 = jnp.sum(x_f32 * x_f32, axis=-1, keepdims=True)
        no2 = jnp.sum(out * out, axis=-1, keepdims=True)
        eps = 1e-8
        # cos = dot / max(||x||*||out||, eps)  ==  dot * rsqrt(max(nx2*no2, eps^2))
        cos_ref[0] = (dot * lax.rsqrt(jnp.maximum(nx2 * no2, eps * eps))
                      ).astype(cos_ref.dtype)


def sdpa_cos_pallas(x, wq, wk, wv, wo, *, num_heads, q_tile=None, kv_tile=None):
    B, S, D = x.shape
    H = num_heads
    assert D % H == 0
    dh = D // H
    tq = q_tile if q_tile is not None else min(S, 128)
    tkv = kv_tile if kv_tile is not None else min(S, 128)
    assert S % tq == 0 and S % tkv == 0 and tq % 8 == 0 and tkv % 8 == 0
    nq, nkv = S // tq, S // tkv
    scale = 1.0 / float(dh) ** 0.5

    cdt = jnp.bfloat16                              # MXU-native operand dtype
    xb = x.astype(cdt)
    # Pack all four projections as per-head slices -> one weight input whose
    # BlockSpec streams only the live head's (D, dh) slices.
    wq_h = wq.astype(cdt).reshape(D, H, dh).transpose(1, 0, 2)    # (H, D, dh)
    wk_h = wk.astype(cdt).reshape(D, H, dh).transpose(1, 0, 2)
    wv_h = wv.astype(cdt).reshape(D, H, dh).transpose(1, 0, 2)
    woT_h = wo.astype(cdt).reshape(H, dh, D).transpose(0, 2, 1)   # (H, D, dh) = Wo_h^T
    w_all = jnp.stack([wq_h, wk_h, wv_h, woT_h], axis=0)          # (4, H, D, dh)

    kernel = functools.partial(_flash_sdpa_cos_kernel, tq=tq, tkv=tkv, scale=scale)

    out, cos = pl.pallas_call(
        kernel,
        out_shape=(jax.ShapeDtypeStruct((B, S, D), x.dtype),
                   jax.ShapeDtypeStruct((B, S, 1), jnp.float32)),
        grid_spec=pltpu.PrefetchScalarGridSpec(
            num_scalar_prefetch=0,
            grid=(B, nq, H, nkv),
            in_specs=[
                # x rows for the q tile (also reused for the cosine)
                pl.BlockSpec((1, tq, D), lambda b, qi, h, kj: (b, qi, 0)),
                # x rows for the kv tile
                pl.BlockSpec((1, tkv, D), lambda b, qi, h, kj: (b, kj, 0)),
                # per-head weight slices: Wq_h, Wk_h, Wv_h, Wo_h^T
                pl.BlockSpec((4, 1, D, dh), lambda b, qi, h, kj: (0, h, 0, 0)),
            ],
            out_specs=[
                pl.BlockSpec((1, tq, D), lambda b, qi, h, kj: (b, qi, 0)),
                pl.BlockSpec((1, tq, 1), lambda b, qi, h, kj: (b, qi, 0)),
            ],
            scratch_shapes=[
                pltpu.VMEM((tq, dh), cdt),           # scaled Q for this head
                pltpu.VMEM((tq, 1), jnp.float32),    # running row max
                pltpu.VMEM((tq, 1), jnp.float32),    # running softmax denom
                pltpu.VMEM((tq, dh), jnp.float32),   # per-head P@V accumulator
                pltpu.VMEM((tq, D), jnp.float32),    # cross-head output accumulator
            ]),
        compiler_params=pltpu.CompilerParams(
            dimension_semantics=("parallel", "parallel", "arbitrary", "arbitrary"),
            vmem_limit_bytes=32 * 1024 * 1024),
    )(xb, xb, w_all)
    return out, cos


# --- wrapped module (stands in for transformers' LlamaSdpaAttention) ----------
class LlamaSdpaAttention:
    def __init__(self, hidden_size, num_heads, key, q_tile=None, kv_tile=None):
        self.num_heads = num_heads
        self.q_tile = q_tile
        self.kv_tile = kv_tile
        ks = jax.random.split(key, 4)
        s = 1.0 / (hidden_size ** 0.5)
        mk = lambda k: (jax.random.normal(k, (hidden_size, hidden_size)) * s
                        ).astype(jnp.bfloat16)
        self.wq, self.wk, self.wv, self.wo = mk(ks[0]), mk(ks[1]), mk(ks[2]), mk(ks[3])

    def __call__(self, *args, **kwargs):
        hidden_states = kwargs.get('hidden_states')
        if hidden_states is None:
            hidden_states = args[0]
        attn_out, cos = sdpa_cos_pallas(
            hidden_states, self.wq, self.wk, self.wv, self.wo,
            num_heads=self.num_heads, q_tile=self.q_tile, kv_tile=self.kv_tile)
        # mirror HF attention's tuple return: (attn_output, extra...)
        return (attn_out, cos[..., 0])


# --- the recorder itself (same control flow as the PyTorch module) ------------
class SimilarityRecorder:
    def __init__(self, module):
        self.module = module

    def __call__(self, *args, **kwargs):
        if self.module.__class__.__name__ == 'LlamaSdpaAttention':
            output = self.module(*args, **kwargs)
            hidden_state_input.append(kwargs.get('hidden_states'))
            hidden_state_attn.append(output[0])
        else:
            output = self.module(*args, **kwargs)
        return output


# --- pure-JAX f32 reference for a sanity check ---------------------------------
def _reference(x, wq, wk, wv, wo, num_heads):
    x32 = x.astype(jnp.float32)
    wq32, wk32, wv32, wo32 = (w.astype(jnp.float32) for w in (wq, wk, wv, wo))
    B, S, D = x.shape
    dh = D // num_heads
    q = (x32 @ wq32).reshape(B, S, num_heads, dh).transpose(0, 2, 1, 3)
    k = (x32 @ wk32).reshape(B, S, num_heads, dh).transpose(0, 2, 1, 3)
    v = (x32 @ wv32).reshape(B, S, num_heads, dh).transpose(0, 2, 1, 3)
    s = jnp.einsum('bhqd,bhkd->bhqk', q, k) / (dh ** 0.5)
    mask = jnp.tril(jnp.ones((S, S), bool))
    s = jnp.where(mask, s, -1e30)
    p = jax.nn.softmax(s, axis=-1)
    o = jnp.einsum('bhqk,bhkd->bhqd', p, v).transpose(0, 2, 1, 3).reshape(B, S, D)
    out = o @ wo32
    eps = 1e-8
    nx = jnp.linalg.norm(x32, axis=-1)
    no = jnp.linalg.norm(out, axis=-1)
    cos = jnp.sum(x32 * out, -1) / jnp.maximum(nx * no, eps)
    return out, cos


if __name__ == "__main__":
    # small shapes, but with 2x2 q/kv tiles so the flash accumulation and the
    # causal tile-skip paths are actually exercised.
    B, S, D, H = 2, 32, 32, 4
    key = jax.random.PRNGKey(0)
    k_x, k_w = jax.random.split(key)
    x = jax.random.normal(k_x, (B, S, D), dtype=jnp.float32).astype(jnp.bfloat16)

    attn = LlamaSdpaAttention(hidden_size=D, num_heads=H, key=k_w,
                              q_tile=16, kv_tile=16)
    recorder = SimilarityRecorder(attn)

    output = recorder(hidden_states=x)
    attn_out, cos_sim = output
    jax.block_until_ready(attn_out)
    jax.block_until_ready(cos_sim)

    # sanity check against a pure-JAX f32 reference (bf16 kernel -> loose tol)
    ref_out, ref_cos = _reference(x, attn.wq, attn.wk, attn.wv, attn.wo, H)
    assert attn_out.shape == (B, S, D) and cos_sim.shape == (B, S)
    assert jnp.allclose(attn_out.astype(jnp.float32), ref_out, atol=5e-2, rtol=5e-2)
    assert jnp.allclose(cos_sim.astype(jnp.float32), ref_cos, atol=5e-2, rtol=5e-2)
    assert len(hidden_state_input) == 1 and len(hidden_state_attn) == 1

    print("KERNEL_OK")
</pallas_src>

<mosaic_0001>
module attributes {stable_mosaic.version = 11 : i64} {
  func.func @_flash_sdpa_cos_kernel(%arg0: i32, %arg1: i32, %arg2: i32, %arg3: i32, %arg4: memref<1x16x32xbf16, #tpu.memory_space<vmem>>, %arg5: memref<1x16x32xbf16, #tpu.memory_space<vmem>>, %arg6: memref<4x1x32x8xbf16, #tpu.memory_space<vmem>>, %arg7: memref<1x16x32xbf16, #tpu.memory_space<vmem>>, %arg8: memref<1x16x1xf32, #tpu.memory_space<vmem>>, %arg9: memref<16x8xbf16, #tpu.memory_space<vmem>>, %arg10: memref<16x1xf32, #tpu.memory_space<vmem>>, %arg11: memref<16x1xf32, #tpu.memory_space<vmem>>, %arg12: memref<16x8xf32, #tpu.memory_space<vmem>>, %arg13: memref<16x32xf32, #tpu.memory_space<vmem>>) attributes {dimension_semantics = [#tpu.dimension_semantics<parallel>, #tpu.dimension_semantics<parallel>, #tpu.dimension_semantics<arbitrary>, #tpu.dimension_semantics<arbitrary>], iteration_bounds = array<i64: 2, 2, 4, 2>, scalar_prefetch = 0 : i64, scratch_operands = 5 : i64, tpu.core_type = #tpu.core_type<tc>, window_params = [{transform_indices = @transform_0, window_bounds = array<i64: 1, 16, 32>}, {transform_indices = @transform_1, window_bounds = array<i64: 1, 16, 32>}, {transform_indices = @transform_2, window_bounds = array<i64: 4, 1, 32, 8>}, {transform_indices = @transform_3, window_bounds = array<i64: 1, 16, 32>}, {transform_indices = @transform_4, window_bounds = array<i64: 1, 16, 1>}]} {
    %c0_i32 = arith.constant 0 : i32
    %0 = arith.cmpi eq, %arg2, %c0_i32 : i32
    %c0_i32_0 = arith.constant 0 : i32
    %1 = arith.cmpi eq, %arg3, %c0_i32_0 : i32
    %2 = arith.andi %0, %1 : i1
    %3 = arith.extui %2 : i1 to i32
    %c0_i32_1 = arith.constant 0 : i32
    %4 = arith.cmpi ne, %3, %c0_i32_1 : i32
    scf.if %4 {
      %cst = arith.constant 0.000000e+00 : f32
      %22 = vector.broadcast %cst : f32 to vector<16x32xf32>
      %c0 = arith.constant 0 : index
      %c0_9 = arith.constant 0 : index
      %23 = vector.load %arg13[%c0, %c0_9] : memref<16x32xf32, #tpu.memory_space<vmem>>, vector<16x32xf32>
      tpu.vector_store %arg13[%c0, %c0_9], %22 {strides = array<i32>} : memref<16x32xf32, #tpu.memory_space<vmem>>, vector<16x32xf32>,
    } else {
    }
    %c0_i32_2 = arith.constant 0 : i32
    %5 = arith.cmpi eq, %arg3, %c0_i32_2 : i32
    %6 = arith.extui %5 : i1 to i32
    %c0_i32_3 = arith.constant 0 : i32
    %7 = arith.cmpi ne, %6, %c0_i32_3 : i32
    scf.if %7 {
      %c0 = arith.constant 0 : index
      %c0_9 = arith.constant 0 : index
      %c0_10 = arith.constant 0 : index
      %22 = vector.load %arg4[%c0, %c0_9, %c0_10] : memref<1x16x32xbf16, #tpu.memory_space<vmem>>, vector<1x16x32xbf16>
      %23 = vector.shape_cast %22 : vector<1x16x32xbf16> to vector<16x32xbf16>
      %c0_11 = arith.constant 0 : index
      %c0_12 = arith.constant 0 : index
      %c0_13 = arith.constant 0 : index
      %c0_14 = arith.constant 0 : index
      %24 = vector.load %arg6[%c0_11, %c0_12, %c0_13, %c0_14] : memref<4x1x32x8xbf16, #tpu.memory_space<vmem>>, vector<1x1x32x8xbf16>
      %25 = vector.shape_cast %24 : vector<1x1x32x8xbf16> to vector<32x8xbf16>
      %cst = arith.constant dense<0.000000e+00> : vector<16x8xf32>
      %26 = tpu.matmul %23, %25, %cst {dimension_numbers = #tpu.dot_dimension_numbers<[1], [0], [0], [1], [0, 0, 1, 1], [], []>} : vector<16x32xbf16>, vector<32x8xbf16>, vector<16x8xf32> -> vector<16x8xf32>
      %cst_15 = arith.constant 0.353553385 : f32
      %27 = vector.broadcast %cst_15 : f32 to vector<16x8xf32>
      %28 = arith.mulf %26, %27 : vector<16x8xf32>
      %29 = arith.truncf %28 : vector<16x8xf32> to vector<16x8xbf16>
      %c0_16 = arith.constant 0 : index
      %c0_17 = arith.constant 0 : index
      %30 = vector.load %arg9[%c0_16, %c0_17] : memref<16x8xbf16, #tpu.memory_space<vmem>>, vector<16x8xbf16>
      tpu.vector_store %arg9[%c0_16, %c0_17], %29 {strides = array<i32>} : memref<16x8xbf16, #tpu.memory_space<vmem>>, vector<16x8xbf16>,
      %cst_18 = arith.constant -1.000000e+30 : f32
      %31 = vector.broadcast %cst_18 : f32 to vector<16x1xf32>
      %c0_19 = arith.constant 0 : index
      %c0_20 = arith.constant 0 : index
      %32 = vector.load %arg10[%c0_19, %c0_20] : memref<16x1xf32, #tpu.memory_space<vmem>>, vector<16x1xf32>
      tpu.vector_store %arg10[%c0_19, %c0_20], %31 {strides = array<i32>} : memref<16x1xf32, #tpu.memory_space<vmem>>, vector<16x1xf32>,
      %cst_21 = arith.constant 0.000000e+00 : f32
      %33 = vector.broadcast %cst_21 : f32 to vector<16x1xf32>
      %c0_22 = arith.constant 0 : index
      %c0_23 = arith.constant 0 : index
      %34 = vector.load %arg11[%c0_22, %c0_23] : memref<16x1xf32, #tpu.memory_space<vmem>>, vector<16x1xf32>
      tpu.vector_store %arg11[%c0_22, %c0_23], %33 {strides = array<i32>} : memref<16x1xf32, #tpu.memory_space<vmem>>, vector<16x1xf32>,
      %cst_24 = arith.constant 0.000000e+00 : f32
      %35 = vector.broadcast %cst_24 : f32 to vector<16x8xf32>
      %c0_25 = arith.constant 0 : index
      %c0_26 = arith.constant 0 : index
      %36 = vector.load %arg12[%c0_25, %c0_26] : memref<16x8xf32, #tpu.memory_space<vmem>>, vector<16x8xf32>
      tpu.vector_store %arg12[%c0_25, %c0_26], %35 {strides = array<i32>} : memref<16x8xf32, #tpu.memory_space<vmem>>, vector<16x8xf32>,
    } else {
    }
    %c16_i32 = arith.constant 16 : i32
    %8 = arith.muli %arg1, %c16_i32 : i32
    %c16_i32_4 = arith.constant 16 : i32
    %9 = arith.muli %arg3, %c16_i32_4 : i32
    %c15_i32 = arith.constant 15 : i32
    %10 = arith.addi %8, %c15_i32 : i32
    %11 = arith.cmpi sle, %9, %10 : i32
    %12 = arith.extui %11 : i1 to i32
    %c0_i32_5 = arith.constant 0 : i32
    %13 = arith.cmpi ne, %12, %c0_i32_5 : i32
    scf.if %13 {
      %c0 = arith.constant 0 : index
      %c0_9 = arith.constant 0 : index
      %c0_10 = arith.constant 0 : index
      %22 = vector.load %arg5[%c0, %c0_9, %c0_10] : memref<1x16x32xbf16, #tpu.memory_space<vmem>>, vector<1x16x32xbf16>
      %23 = vector.shape_cast %22 : vector<1x16x32xbf16> to vector<16x32xbf16>
      %c1 = arith.constant 1 : index
      %c0_11 = arith.constant 0 : index
      %c0_12 = arith.constant 0 : index
      %c0_13 = arith.constant 0 : index
      %24 = vector.load %arg6[%c1, %c0_11, %c0_12, %c0_13] : memref<4x1x32x8xbf16, #tpu.memory_space<vmem>>, vector<1x1x32x8xbf16>
      %25 = vector.shape_cast %24 : vector<1x1x32x8xbf16> to vector<32x8xbf16>
      %cst = arith.constant dense<0.000000e+00> : vector<16x8xf32>
      %26 = tpu.matmul %23, %25, %cst {dimension_numbers = #tpu.dot_dimension_numbers<[1], [0], [0], [1], [0, 0, 1, 1], [], []>} : vector<16x32xbf16>, vector<32x8xbf16>, vector<16x8xf32> -> vector<16x8xf32>
      %27 = arith.truncf %26 : vector<16x8xf32> to vector<16x8xbf16>
      %c2 = arith.constant 2 : index
      %c0_14 = arith.constant 0 : index
      %c0_15 = arith.constant 0 : index
      %c0_16 = arith.constant 0 : index
      %28 = vector.load %arg6[%c2, %c0_14, %c0_15, %c0_16] : memref<4x1x32x8xbf16, #tpu.memory_space<vmem>>, vector<1x1x32x8xbf16>
      %29 = vector.shape_cast %28 : vector<1x1x32x8xbf16> to vector<32x8xbf16>
      %cst_17 = arith.constant dense<0.000000e+00> : vector<16x8xf32>
      %30 = tpu.matmul %23, %29, %cst_17 {dimension_numbers = #tpu.dot_dimension_numbers<[1], [0], [0], [1], [0, 0, 1, 1], [], []>} : vector<16x32xbf16>, vector<32x8xbf16>, vector<16x8xf32> -> vector<16x8xf32>
      %31 = arith.truncf %30 : vector<16x8xf32> to vector<16x8xbf16>
      %c0_18 = arith.constant 0 : index
      %c0_19 = arith.constant 0 : index
      %32 = vector.load %arg9[%c0_18, %c0_19] : memref<16x8xbf16, #tpu.memory_space<vmem>>, vector<16x8xbf16>
      %cst_20 = arith.constant dense<0.000000e+00> : vector<16x16xf32>
      %33 = tpu.matmul %32, %27, %cst_20 {dimension_numbers = #tpu.dot_dimension_numbers<[1], [1], [0], [0], [0, 0, 1, 0], [], []>} : vector<16x8xbf16>, vector<16x8xbf16>, vector<16x16xf32> -> vector<16x16xf32>
      %34 = tpu.iota {dimensions = array<i32: 0>} : vector<16x16xi32>
      %35 = vector.broadcast %8 : i32 to vector<16x16xi32>
      %36 = arith.addi %35, %34 : vector<16x16xi32>
      %37 = tpu.iota {dimensions = array<i32: 1>} : vector<16x16xi32>
      %38 = vector.broadcast %9 : i32 to vector<16x16xi32>
      %39 = arith.addi %38, %37 : vector<16x16xi32>
      %40 = arith.cmpi sge, %36, %39 : vector<16x16xi32>
      %cst_21 = arith.constant -1.000000e+30 : f32
      %41 = vector.broadcast %cst_21 : f32 to vector<16x16xf32>
      %42 = arith.select %40, %33, %41 : vector<16x16xi1>, vector<16x16xf32>
      %c0_22 = arith.constant 0 : index
      %c0_23 = arith.constant 0 : index
      %43 = vector.load %arg10[%c0_22, %c0_23] : memref<16x1xf32, #tpu.memory_space<vmem>>, vector<16x1xf32>
      %cst_24 = arith.constant dense<0xFF800000> : vector<16xf32>
      %44 = vector.multi_reduction <maximumf>, %42, %cst_24 [1] : vector<16x16xf32> to vector<16xf32>
      %45 = vector.shape_cast %44 : vector<16xf32> to vector<16x1xf32>
      %46 = arith.maximumf %43, %45 : vector<16x1xf32>
      %47 = arith.subf %43, %46 : vector<16x1xf32>
      %48 = math.exp %47 : vector<16x1xf32>
      %49 = vector.broadcast %46 : vector<16x1xf32> to vector<16x16xf32>
      %50 = arith.subf %42, %49 : vector<16x16xf32>
      %51 = math.exp %50 : vector<16x16xf32>
      %c0_25 = arith.constant 0 : index
      %c0_26 = arith.constant 0 : index
      %52 = vector.load %arg11[%c0_25, %c0_26] : memref<16x1xf32, #tpu.memory_space<vmem>>, vector<16x1xf32>
      %53 = arith.mulf %48, %52 : vector<16x1xf32>
      %cst_27 = arith.constant dense<0.000000e+00> : vector<16xf32>
      %54 = vector.multi_reduction <add>, %51, %cst_27 [1] : vector<16x16xf32> to vector<16xf32>
      %55 = vector.shape_cast %54 : vector<16xf32> to vector<16x1xf32>
      %56 = arith.addf %53, %55 : vector<16x1xf32>
      %c0_28 = arith.constant 0 : index
      %c0_29 = arith.constant 0 : index
      %57 = vector.load %arg11[%c0_28, %c0_29] : memref<16x1xf32, #tpu.memory_space<vmem>>, vector<16x1xf32>
      tpu.vector_store %arg11[%c0_28, %c0_29], %56 {strides = array<i32>} : memref<16x1xf32, #tpu.memory_space<vmem>>, vector<16x1xf32>,
      %c0_30 = arith.constant 0 : index
      %c0_31 = arith.constant 0 : index
      %58 = vector.load %arg12[%c0_30, %c0_31] : memref<16x8xf32, #tpu.memory_space<vmem>>, vector<16x8xf32>
      %59 = vector.broadcast %48 : vector<16x1xf32> to vector<16x8xf32>
      %60 = arith.mulf %59, %58 : vector<16x8xf32>
      %61 = arith.truncf %51 : vector<16x16xf32> to vector<16x16xbf16>
      %cst_32 = arith.constant dense<0.000000e+00> : vector<16x8xf32>
      %62 = tpu.matmul %61, %31, %cst_32 {dimension_numbers = #tpu.dot_dimension_numbers<[1], [0], [0], [1], [0, 0, 1, 1], [], []>} : vector<16x16xbf16>, vector<16x8xbf16>, vector<16x8xf32> -> vector<16x8xf32>
      %63 = arith.addf %60, %62 : vector<16x8xf32>
      %c0_33 = arith.constant 0 : index
      %c0_34 = arith.constant 0 : index
      %64 = vector.load %arg12[%c0_33, %c0_34] : memref<16x8xf32, #tpu.memory_space<vmem>>, vector<16x8xf32>
      tpu.vector_store %arg12[%c0_33, %c0_34], %63 {strides = array<i32>} : memref<16x8xf32, #tpu.memory_space<vmem>>, vector<16x8xf32>,
      %c0_35 = arith.constant 0 : index
      %c0_36 = arith.constant 0 : index
      %65 = vector.load %arg10[%c0_35, %c0_36] : memref<16x1xf32, #tpu.memory_space<vmem>>, vector<16x1xf32>
      tpu.vector_store %arg10[%c0_35, %c0_36], %46 {strides = array<i32>} : memref<16x1xf32, #tpu.memory_space<vmem>>, vector<16x1xf32>,
    } else {
    }
    %c1_i32 = arith.constant 1 : i32
    %14 = arith.cmpi eq, %arg3, %c1_i32 : i32
    %15 = arith.extui %14 : i1 to i32
    %c0_i32_6 = arith.constant 0 : i32
    %16 = arith.cmpi ne, %15, %c0_i32_6 : i32
    scf.if %16 {
      %c0 = arith.constant 0 : index
      %c0_9 = arith.constant 0 : index
      %22 = vector.load %arg11[%c0, %c0_9] : memref<16x1xf32, #tpu.memory_space<vmem>>, vector<16x1xf32>
      %23 = tpu.reciprocal %22 {approx = true} : vector<16x1xf32> -> vector<16x1xf32>
      %c0_10 = arith.constant 0 : index
      %c0_11 = arith.constant 0 : index
      %24 = vector.load %arg12[%c0_10, %c0_11] : memref<16x8xf32, #tpu.memory_space<vmem>>, vector<16x8xf32>
      %25 = vector.broadcast %23 : vector<16x1xf32> to vector<16x8xf32>
      %26 = arith.mulf %24, %25 : vector<16x8xf32>
      %27 = arith.truncf %26 : vector<16x8xf32> to vector<16x8xbf16>
      %c0_12 = arith.constant 0 : index
      %c0_13 = arith.constant 0 : index
      %28 = vector.load %arg13[%c0_12, %c0_13] : memref<16x32xf32, #tpu.memory_space<vmem>>, vector<16x32xf32>
      %c3 = arith.constant 3 : index
      %c0_14 = arith.constant 0 : index
      %c0_15 = arith.constant 0 : index
      %c0_16 = arith.constant 0 : index
      %29 = vector.load %arg6[%c3, %c0_14, %c0_15, %c0_16] : memref<4x1x32x8xbf16, #tpu.memory_space<vmem>>, vector<1x1x32x8xbf16>
      %30 = vector.shape_cast %29 : vector<1x1x32x8xbf16> to vector<32x8xbf16>
      %cst = arith.constant dense<0.000000e+00> : vector<16x32xf32>
      %31 = tpu.matmul %27, %30, %cst {dimension_numbers = #tpu.dot_dimension_numbers<[1], [1], [0], [0], [0, 0, 1, 0], [], []>} : vector<16x8xbf16>, vector<32x8xbf16>, vector<16x32xf32> -> vector<16x32xf32>
      %32 = arith.addf %28, %31 : vector<16x32xf32>
      %c0_17 = arith.constant 0 : index
      %c0_18 = arith.constant 0 : index
      %33 = vector.load %arg13[%c0_17, %c0_18] : memref<16x32xf32, #tpu.memory_space<vmem>>, vector<16x32xf32>
      tpu.vector_store %arg13[%c0_17, %c0_18], %32 {strides = array<i32>} : memref<16x32xf32, #tpu.memory_space<vmem>>, vector<16x32xf32>,
    } else {
    }
    %c3_i32 = arith.constant 3 : i32
    %17 = arith.cmpi eq, %arg2, %c3_i32 : i32
    %c1_i32_7 = arith.constant 1 : i32
    %18 = arith.cmpi eq, %arg3, %c1_i32_7 : i32
    %19 = arith.andi %17, %18 : i1
    %20 = arith.extui %19 : i1 to i32
    %c0_i32_8 = arith.constant 0 : i32
    %21 = arith.cmpi ne, %20, %c0_i32_8 : i32
    scf.if %21 {
      %c0 = arith.constant 0 : index
      %c0_9 = arith.constant 0 : index
      %22 = vector.load %arg13[%c0, %c0_9] : memref<16x32xf32, #tpu.memory_space<vmem>>, vector<16x32xf32>
      %23 = arith.truncf %22 : vector<16x32xf32> to vector<16x32xbf16>
      %c0_10 = arith.constant 0 : index
      %c0_11 = arith.constant 0 : index
      %c0_12 = arith.constant 0 : index
      %24 = vector.load %arg7[%c0_10, %c0_11, %c0_12] : memref<1x16x32xbf16, #tpu.memory_space<vmem>>, vector<1x16x32xbf16>
      %25 = vector.shape_cast %24 : vector<1x16x32xbf16> to vector<16x32xbf16>
      %26 = vector.shape_cast %23 : vector<16x32xbf16> to vector<1x16x32xbf16>
      tpu.vector_store %arg7[%c0_10, %c0_11, %c0_12], %26 {strides = array<i32>} : memref<1x16x32xbf16, #tpu.memory_space<vmem>>, vector<1x16x32xbf16>,
      %c0_13 = arith.constant 0 : index
      %c0_14 = arith.constant 0 : index
      %c0_15 = arith.constant 0 : index
      %27 = vector.load %arg4[%c0_13, %c0_14, %c0_15] : memref<1x16x32xbf16, #tpu.memory_space<vmem>>, vector<1x16x32xbf16>
      %28 = vector.shape_cast %27 : vector<1x16x32xbf16> to vector<16x32xbf16>
      %29 = arith.extf %28 : vector<16x32xbf16> to vector<16x32xf32>
      %30 = arith.mulf %29, %22 : vector<16x32xf32>
      %cst = arith.constant dense<0.000000e+00> : vector<16xf32>
      %31 = vector.multi_reduction <add>, %30, %cst [1] : vector<16x32xf32> to vector<16xf32>
      %32 = vector.shape_cast %31 : vector<16xf32> to vector<16x1xf32>
      %33 = arith.mulf %29, %29 : vector<16x32xf32>
      %cst_16 = arith.constant dense<0.000000e+00> : vector<16xf32>
      %34 = vector.multi_reduction <add>, %33, %cst_16 [1] : vector<16x32xf32> to vector<16xf32>
      %35 = vector.shape_cast %34 : vector<16xf32> to vector<16x1xf32>
      %36 = arith.mulf %22, %22 : vector<16x32xf32>
      %cst_17 = arith.constant dense<0.000000e+00> : vector<16xf32>
      %37 = vector.multi_reduction <add>, %36, %cst_17 [1] : vector<16x32xf32> to vector<16xf32>
      %38 = vector.shape_cast %37 : vector<16xf32> to vector<16x1xf32>
      %39 = arith.mulf %35, %38 : vector<16x1xf32>
      %cst_18 = arith.constant 1.000000e-16 : f32
      %40 = vector.broadcast %cst_18 : f32 to vector<16x1xf32>
      %41 = arith.maximumf %39, %40 : vector<16x1xf32>
      %42 = math.rsqrt %41 : vector<16x1xf32>
      %43 = arith.mulf %32, %42 : vector<16x1xf32>
      %c0_19 = arith.constant 0 : index
      %c0_20 = arith.constant 0 : index
      %c0_21 = arith.constant 0 : index
      %44 = vector.load %arg8[%c0_19, %c0_20, %c0_21] : memref<1x16x1xf32, #tpu.memory_space<vmem>>, vector<1x16x1xf32>
      %45 = vector.shape_cast %44 : vector<1x16x1xf32> to vector<16x1xf32>
      %46 = vector.shape_cast %43 : vector<16x1xf32> to vector<1x16x1xf32>
      tpu.vector_store %arg8[%c0_19, %c0_20, %c0_21], %46 {strides = array<i32>} : memref<1x16x1xf32, #tpu.memory_space<vmem>>, vector<1x16x1xf32>,
    } else {
    }
    return
  }
  func.func @transform_0(%arg0: i32, %arg1: i32, %arg2: i32, %arg3: i32) -> (i32, i32, i32) {
    %c0_i32 = arith.constant 0 : i32
    %c0_i32_0 = arith.constant 0 : i32
    return %arg0, %arg1, %c0_i32 : i32, i32, i32
  }
  func.func @transform_1(%arg0: i32, %arg1: i32, %arg2: i32, %arg3: i32) -> (i32, i32, i32) {
    %c0_i32 = arith.constant 0 : i32
    %c0_i32_0 = arith.constant 0 : i32
    return %arg0, %arg3, %c0_i32 : i32, i32, i32
  }
  func.func @transform_2(%arg0: i32, %arg1: i32, %arg2: i32, %arg3: i32) -> (i32, i32, i32, i32) {
    %c0_i32 = arith.constant 0 : i32
    %c0_i32_0 = arith.constant 0 : i32
    %c0_i32_1 = arith.constant 0 : i32
    %c0_i32_2 = arith.constant 0 : i32
    return %c0_i32, %arg2, %c0_i32_0, %c0_i32_1 : i32, i32, i32, i32
  }
  func.func @transform_3(%arg0: i32, %arg1: i32, %arg2: i32, %arg3: i32) -> (i32, i32, i32) {
    %c0_i32 = arith.constant 0 : i32
    %c0_i32_0 = arith.constant 0 : i32
    return %arg0, %arg1, %c0_i32 : i32, i32, i32
  }
  func.func @transform_4(%arg0: i32, %arg1: i32, %arg2: i32, %arg3: i32) -> (i32, i32, i32) {
    %c0_i32 = arith.constant 0 : i32
    %c0_i32_0 = arith.constant 0 : i32
    return %arg0, %arg1, %c0_i32 : i32, i32, i32
  }
}

</mosaic_0001>

<bundles_post_ra>
// kernel: tpu_custom_call.1
= control target key start
LH: loop header
LB: loop body
LE: loop exit
PB: predicated region body
PF: predicated region fallthrough
CT: control target
= control target key end

     0   :  { %s1957_s0 = inlined_call_operand.vmem [shape: bf16[2,32,32], index: 0, kind: input, shape index: {}]   ;;  %s1958_s1 = inlined_call_operand.vmem [shape: bf16[2,32,32], index: 1, kind: input, shape index: {}]   ;;  %s1959_s2 = inlined_call_operand.vmem [shape: bf16[4,4,32,8], index: 2, kind: input, shape index: {}]   ;;  %s1960_s3 = inlined_call_operand.hbm [shape: bf16[2,32,32], index: 3, kind: output, shape index: {0}]   ;;  %s1961_s4 = inlined_call_operand.vmem [shape: f32[2,32,1], index: 4, kind: output, shape index: {1}]  }
   0x1   :  { %1973 = sst [smem:[#allocation24_spill]] %s1959_s2 }
   0x2   :  { %10 = vsyncpa [#allocation9], 0 }
   0x3   :  { %12 = vsyncpa [#allocation9 + $0x1], 0  ;;  %s1647_s15 = smov 0   ;;  %s1649_s16 = smov 0  }
   0x4   :  { %s1651_s17 = smov 0   ;;  %s1653_s18 = smov 0  }
   0x5   :  { %s1655_s19 = smov 0   ;;  %s1657_s20 = smov 0  }
   0x6   :  { %s1659_s21 = smov 0   ;;  %s1661_s22 = smov 0  }
   0x7   :  { %s1663_s23 = smov 0   ;;  %s1665_s24 = smov 0  }
   0x8   :  { %s1667_s25 = smov 0   ;;  %s1669_s26 = smov 0  }
   0x9   :  { %s1671_s27 = smov 0   ;;  %s1673_s28 = smov 0  }
   0xa LB: > { %1974 = sst [smem:[#allocation11_spill]] %s1563_s17  ;;  %s1178_s29 = sadd.s32 4294967295, %s1607_s28   ;;  %s1607_s28 = sphi %s1673_s28, %s18_s28   ;;  %s1603_s27 = sphi %s1671_s27, %s2011_s27   ;;  %s1599_s26 = sphi %s1669_s26, %s2004_s26   ;;  %s1595_s25 = sphi %s1667_s25, %s2003_s25   ;;  %s1591_s24 = sphi %s1665_s24, %s2002_s24   ;;  %s1587_s23 = sphi %s1663_s23, %s2001_s23   ;;  %s1583_s22 = sphi %s1661_s22, %s2010_s22   ;;  %s1579_s21 = sphi %s1659_s21, %s2009_s21   ;;  %s1575_s20 = sphi %s1657_s20, %s1998_s20   ;;  %s1571_s19 = sphi %s1655_s19, %s1997_s19   ;;  %s1567_s18 = sphi %s1653_s18, %s1996_s18   ;;  %s1563_s17 = sphi %s1651_s17, %s1995_s17   ;;  %s1559_s16 = sphi %s1649_s16, %s2008_s16   ;;  %s1555_s15 = sphi %s1647_s15, %s2007_s15  }
   0xb   : > { %1975 = sst [smem:[#allocation12_spill]] %s1571_s19  ;;  %s1179_s30 = sadd.s32 4294967294, %s1607_s28  }
   0xc   : > { %1976 = sst [smem:[#allocation13_spill]] %s1591_s24  ;;  %s33_s5 = sadd.s32 1, %s1591_s24 }
   0xd   : > { %1977 = sst [smem:[#allocation14_spill]] %s1595_s25  ;;  %p34_p0 = scmp.ge.s32.totalorder %s33_s5, 2 }
   0xe   : > { %1978 = sst [smem:[#allocation15_spill]] %s1599_s26  ;;  %s36_s6 = sadd.s32 1, %s1595_s25 }
   0xf   : > { %1979 = sst [smem:[#allocation16_spill]] %s1603_s27  ;;  %s40_s7 = sadd.s32 1, %s1599_s26 }
  0x10   : > { %s44_s8 = sadd.s32 1, %s1603_s27  ;;  %s2013_s5 = smov (%p34_p0, %s33_s5), 0 }
  0x11   : > { %1980 = sst [smem:[#allocation17_spill]] %s2013_s5  ;;  %s2015_s6 = smov (!%p34_p0, %s36_s6), %s1595_s25 }
  0x12   : > { %p114_p1 = scmp.ne.s32.totalorder %s1571_s19, %s1567_s18  ;;  %p115_p2 = scmp.eq.s32.totalorder %s1607_s28, 0 }
  0x13   : > { %p38_p3 = scmp.ge.s32.totalorder %s2015_s6, 4  ;;  %s107_s9 = sadd.s32 1, %s1571_s19 }
  0x14   : > { %p1730_p4 = por %p115_p2, %p114_p1  ;;  %p145_p5 = scmp.ne.s32.totalorder %s1563_s17, %s1559_s16 }
  0x15   : > { %s2017_s6 = smov (%p38_p3, %s2015_s6), 0  ;;  %s2019_s7 = smov (!%p38_p3, %s40_s7), %s1599_s26 }
  0x16   : > { %1982 = sst [smem:[#allocation18_spill]] %s2017_s6  ;;  %s104_s11 = ssub.s32 %s1595_s25, %s2017_s6 }
  0x17   : > { %p146_p6 = scmp.eq.s32.totalorder %s1178_s29, 31  ;;  %p42_p7 = scmp.ge.s32.totalorder %s2019_s7, 2 }
  0x18   : > { %p105_p8 = scmp.eq.s32.totalorder %s104_s11, 0  ;;  %p151_p10 = scmp.ne.s32.totalorder %s1559_s16, %s1555_s15 }
  0x19   : > { %p1741_p9 = por %p146_p6, %p145_p5  ;;  %s2021_s7 = smov (%p42_p7, %s2019_s7), 0 }
  0x1a   : > { %1984 = sst [smem:[#allocation19_spill]] %s2021_s7  ;;  %s2023_s8 = smov (!%p42_p7, %s44_s8), %s1603_s27 }
  0x1b   : > { %s1751_s13 = scalar_select %p105_p8, %s1571_s19, %s107_s9  }
  0x1c   : > { %p46_p11 = scmp.ge.s32.totalorder %s2023_s8, 2  ;;  %s131_s14 = ssub.s32 %s1599_s26, %s2021_s7 }
  0x1d   : > { %1985 = sst [smem:[#allocation20_spill]] %s1751_s13  ;;  %p152_p12 = scmp.eq.s32.totalorder %s1179_s30, 31 }
  0x1e   : > { %s2025_s8 = smov (%p46_p11, %s2023_s8), 0  ;;  %s135_s5 = sadd.s32 1, %s1563_s17 }
  0x1f   : > { %1986 = sst [smem:[#allocation21_spill]] %s2025_s8  ;;  %p1757_p13 = por %p152_p12, %p151_p10 }
  0x20   : > { %s130_s11 = ssub.s32 %s1603_s27, %s2025_s8  ;;  %p1181_p1 = scmp.ge.s32.totalorder %s1607_s28, 32 }
  0x21   : > { %s1987_s29 = scalar_select %p1757_p13, 1, 0 }
  0x22   : > { %s132_s6 = sor.u32 %s131_s14, %s130_s11  ;;  %196 = sbr.rel (%p1181_p1) target bundleno = 55 (0x37), region = 16 }
  0x23   : > { %1988 = sst [smem:[#allocation22_spill]] %s1987_s29  ;;  %p133_p0 = scmp.eq.s32.totalorder %s132_s6, 0 }
  0x25   : > { %s1765_s24 = scalar_select %p133_p0, %s1563_s17, %s135_s5  }
  0x27   : > { %1989 = sst [smem:[#allocation23_spill]] %s1765_s24 }
  0x29   : > { %225 = sbr.rel (!%p1730_p4) target bundleno = 55 (0x37), region = 28  ;;  %s227_s30 = sand.u32 (%p1730_p4), 1, %s1571_s19  }
  0x2a   : > { %s1238_s9 = sshll.u32 (%p1730_p4), %s1595_s25, 4  ;;  %s1182_s7 = sshll.u32 (%p1730_p4), %s227_s30, 6 }
  0x2b   : > { %s1990_s2 = sld [smem:[#allocation24_spill]] (%p1730_p4)  ;;  %s229_s5 = scalar_lea.vmem (%p1730_p4), [#allocation7], %s1182_s7 }
  0x31   : > { %s232_s8 = scalar_lea.vmem %s1990_s2, %s1238_s9 }
  0x32   : > { %v248_v0 = vld [vmem:[%s232_s8] sm:$0xff]   ;;  %v252_v1 = vld [vmem:[%s232_s8 + $0x8] sm:$0xff]  }
  0x33   : > { %v256_v2 = vld [vmem:[%s232_s8 + $0x40] sm:$0xff]   ;;  %249 = vst [vmem:[%s229_s5] sm:$0xff] %v248_v0   ;;  %253 = vst [vmem:[%s229_s5 + $0x8] sm:$0xff] %v252_v1   ;;  %v260_v3 = vld [vmem:[%s232_s8 + $0x48] sm:$0xff]  }
  0x34   : > { %257 = vst [vmem:[%s229_s5 + $0x10] sm:$0xff] %v256_v2   ;;  %v264_v4 = vld [vmem:[%s232_s8 + $0x80] sm:$0xff]   ;;  %v268_v5 = vld [vmem:[%s232_s8 + $0x88] sm:$0xff]   ;;  %261 = vst [vmem:[%s229_s5 + $0x18] sm:$0xff] %v260_v3  }
  0x35   : > { %265 = vst [vmem:[%s229_s5 + $0x20] sm:$0xff] %v264_v4   ;;  %269 = vst [vmem:[%s229_s5 + $0x28] sm:$0xff] %v268_v5   ;;  %v272_v6 = vld [vmem:[%s232_s8 + $0xc0] sm:$0xff]   ;;  %v276_v7 = vld [vmem:[%s232_s8 + $0xc8] sm:$0xff]  }
  0x36   : > { %273 = vst [vmem:[%s229_s5 + $0x30] sm:$0xff] %v272_v6   ;;  %277 = vst [vmem:[%s229_s5 + $0x38] sm:$0xff] %v276_v7  }
  0x37 PF: > { %p1185_p2 = scmp.ge.s32.totalorder %s1607_s28, 1  ;;  %p333_p3 = scmp.lt.s32.totalorder %s1607_s28, 33 }
  0x39   : > { %p334_p4 = pnand %p1185_p2, %p333_p3 }
  0x3a   : > { %s340_s26 = sand.u32 (!%p334_p4), 1, %s1567_s18   ;;  %s1967_s6 = sand.u32 (!%p334_p4), 1, %s1559_s16  }
  0x3b   : > { %337 = sbr.rel (%p334_p4) target bundleno = 1835 (0x72b), region = 69  ;;  %s1186_s7 = sshll.u32 (!%p334_p4), %s340_s26, 6 }
  0x3c   : > { %s1187_s8 = sshll.u32 (!%p334_p4), %s1967_s6, 3  ;;  %s1782_s10 = sshll.u32 (!%p334_p4), %s1583_s22, 1 }
  0x3d   : > { %p393_p5 = scmp.lt.s32.totalorder (!%p334_p4), %s1587_s23, 1  ;;  %p395_p6 = scmp.lt.s32.totalorder (!%p334_p4), %s1782_s10, 3 }
  0x3e   : > { %s1191_s13 = sshll.u32 (!%p334_p4), %s1575_s20, 1  ;;  %p424_p8 = scmp.eq.s32.totalorder (!%p334_p4), %s1579_s21, 0 }
  0x3f   : > { %p405_p7 = scmp.lt.s32.totalorder (!%p334_p4), %s1191_s13, 3  ;;  %p425_p10 = scmp.eq.s32.totalorder (!%p334_p4), %s1575_s20, 0 }
  0x40   : > { %s1808_s2 = scalar_lea.vmem (!%p334_p4), [#allocation8], %s1187_s8 }
  0x41   : > { %p426_p11 = pnand (!%p334_p4), %p425_p10, %p424_p8 }
  0x42   : > { %s394_s14 = scalar_select %p393_p5, %s1587_s23, 1 }
  0x43   : > { %s396_s11 = scalar_select %p395_p6, %s1782_s10, 3 }
  0x44   : > { %s1189_s30 = sshll.u32 %s394_s14, 2  ;;  %s2027_s13 = smov (!%p405_p7, %s1191_s13), 3  ;;  %vm430_vm0 = vcmask (!%p426_p11), 261120   ;;  %v1609_v8 = vmov (!%p426_p11), 0.0  }
  0x45   : > { %s398_s9 = sadd.s32 %s1189_s30, %s396_s11  ;;  %s408_s24 = sadd.s32 %s1189_s30, %s2027_s13  ;;  %431 = vst.msk [vmem:[#allocation6] sm:$0xff] (!%p426_p11), %vm430_vm0, %v1609_v8  ;;  %432 = vst.msk [vmem:[#allocation6 + $0x8] sm:$0xff] (!%p426_p11), %vm430_vm0, %v1609_v8 }
  0x46   : > { %s1190_s5 = sshll.u32 %s398_s9, 2  ;;  %s1196_s18 = sshll.u32 %s398_s9, 3 }
  0x47   : > { %s1793_s6 = scalar_lea.vmem %s1957_s0, %s1190_s5  ;;  %s1798_s19 = scalar_lea.vmem %s1961_s4, %s1196_s18 }
  0x48   : > { %s1193_s17 = sshll.u32 %s408_s24, 2  ;;  %s1806_s9 = scalar_lea.vmem [#allocation7], %s1186_s7 }
  0x49   : > { %s1804_s29 = scalar_lea.vmem %s1958_s1, %s1193_s17  ;;  %429 = sbr.rel (%p426_p11) target bundleno = 80 (0x50), region = 77 }
  0x50 PF: > { %p1197_p12 = scmp.ne.s32.totalorder %s1575_s20, 0 }
  0x51   : > { %vm509_vm1 = vcmask (!%p1197_p12), 7168   ;;  %v1610_v9 = vmov (!%p1197_p12), 0.0   ;;  %v1611_v10 = vmov (!%p1197_p12), -1e+30   ;;  %v1436_v11 = vld [vmem:[%s1806_s9] sm:$0xff] (!%p1197_p12)   ;;  %vm1612_vm2 = vmmov (!%p1197_p12), 0  }
  0x52   : > { %435 = sbr.rel (%p1197_p12) target bundleno = 309 (0x135), region = 81  ;;  %1261 = vmatprep.subr.bf16.mxu0 (!%p1197_p12), %v1610_v9  ;;  %510 = vst.msk [vmem:[#allocation3] sm:$0xff] (!%p1197_p12), %vm509_vm1, %v1611_v10  ;;  %511 = vst.msk [vmem:[#allocation3 + $0x8] sm:$0xff] (!%p1197_p12), %vm509_vm1, %v1611_v10  ;;  %1265 = vmatprep.mubr.msk.bf16.mxu0 (!%p1197_p12), %vm1612_vm2, %v1610_v9  ;;  %v1437_v12 = vld [vmem:[%s1806_s9 + $0x8] sm:$0xff] (!%p1197_p12)   ;;  %v1438_v13 = vld [vmem:[%s1793_s6] sm:$0xff] (!%p1197_p12)   ;;  %vm459_vm3 = vcmask (!%p1197_p12), 261120  }
  0x53   : > { %512 = vst.msk [vmem:[#allocation4] sm:$0xff] (!%p1197_p12), %vm509_vm1, %v1610_v9  ;;  %513 = vst.msk [vmem:[#allocation4 + $0x8] sm:$0xff] (!%p1197_p12), %vm509_vm1, %v1610_v9  ;;  %1262 = vmatpush3.bf16.msra.mxu0 (!%p1197_p12), %v1436_v11  ;;  %vm507_vm4 = vcmask (!%p1197_p12), 64512  }
  0x54   : > { %1263 = vmatprep.subr.bf16.mxu0 (!%p1197_p12), %v1610_v9  ;;  %514 = vst.msk [vmem:[#allocation5] sm:$0xff] (!%p1197_p12), %vm507_vm4, %v1610_v9  ;;  %515 = vst.msk [vmem:[#allocation5 + $0x8] sm:$0xff] (!%p1197_p12), %vm507_vm4, %v1610_v9 }
  0x57   : > { %1264 = vmatpush3.bf16.msra.mxu0 (!%p1197_p12), %v1437_v12 }
  0x5a   : > { %1266 = vmatmul.mubr.msk.bf16.vlgmr.msra.gmra.mrb[0].mxu0 %vm459_vm3, %v1438_v13 }
 0x12d   : > { %v497_v14 = vpop.f32.mrb[0].mxu0 }
 0x12e   : > { %v1267_v15 = vpop.f32.mrb[1].mxu0  ;;  %v504_v17 = vmul.f32 0.35355338, %v497_v14 }
 0x12f   : > { %v500_v16 = vpop.f32.mrb[2].mxu0 }
 0x130   : > { %v505_v18 = vmul.f32 0.35355338, %v500_v16  ;;  %v1268_v19 = vpop.f32.mrb[3].mxu0 }
 0x132   : > { %v506_v20 = vpack.c.bf16 %v505_v18, %v504_v17 }
 0x134   : > { %508 = vst.msk [vmem:[#allocation2] sm:$0xff] %vm507_vm4, %v506_v20 }
 0x135 PF: > { %s1202_s17 = sshll.u32 %s1583_s22, 4  ;;  %s1203_s24 = sshll.u32 %s1575_s20, 4 }
 0x136   : > { %s518_s25 = sadd.s32 15, %s1202_s17 }
 0x137   : > { %p1204_p0 = scmp.gt.s32.totalorder %s1203_s24, %s518_s25 }
 0x138   : > { %v1441_v21 = vld [vmem:[%s1806_s9 + $0x10] sm:$0xff] (!%p1204_p0)   ;;  %v1613_v22 = vmov (!%p1204_p0), 0.0   ;;  %v1442_v23 = vld [vmem:[%s1806_s9 + $0x18] sm:$0xff] (!%p1204_p0)   ;;  %vm1614_vm5 = vmmov (!%p1204_p0), 0   ;;  %vm547_vm6 = vcmask (!%p1204_p0), 261120   ;;  %vm653_vm7 = vcmask (!%p1204_p0), 64512  }
 0x139   : > { %522 = sbr.rel (%p1204_p0) target bundleno = 1269 (0x4f5), region = 85  ;;  %1269 = vmatprep.subr.bf16.mxu0 (!%p1204_p0), %v1613_v22  ;;  %1277 = vmatprep.subr.bf16.mxu1 (!%p1204_p0), %v1613_v22  ;;  %v1443_v24 = vld [vmem:[%s1804_s29] sm:$0xff] (!%p1204_p0)   ;;  %v1444_v32 = vld [vmem:[%s1806_s9 + $0x20] sm:$0xff] (!%p1204_p0)   ;;  %v1445_v33 = vld [vmem:[%s1806_s9 + $0x28] sm:$0xff] (!%p1204_p0)   ;;  %v701_v34 = vlaneseq (!%p1204_p0)  ;;  %v704_v37 = vstv (!%p1204_p0), %s1202_s17  ;;  %vm717_vm9 = vcmask (!%p1204_p0), 130048   ;;  %v1615_v51 = vmov (!%p1204_p0), 0  }
 0x13a   : > { %1270 = vmatpush3.bf16.msra.mxu0 (!%p1204_p0), %v1441_v21  ;;  %1273 = vmatprep.mubr.msk.bf16.mxu0 (!%p1204_p0), %vm1614_vm5, %v1613_v22  ;;  %v709_v38 = vstv (!%p1204_p0), %s1203_s24  ;;  %v715_v52 = vld [vmem:[#allocation3] sm:$0xff] (!%p1204_p0)  ;;  %vm760_vm11 = vcmask (!%p1204_p0), 7168   ;;  %v716_v55 = vld [vmem:[#allocation3 + $0x8] sm:$0xff] (!%p1204_p0)  ;;  %v748_v16 = vld [vmem:[#allocation4] sm:$0xff] (!%p1204_p0) }
 0x13b   : > { %1271 = vmatprep.subr.bf16.mxu0 (!%p1204_p0), %v1613_v22  ;;  %1281 = vmatprep.mubr.msk.bf16.mxu1 (!%p1204_p0), %vm1614_vm5, %v1613_v22  ;;  %v652_v31 = vld [vmem:[#allocation2] sm:$0xff] (!%p1204_p0)  ;;  %v702_v35 = vshrl.u32 (!%p1204_p0), %v701_v34, 7  ;;  %v708_v36 = vand.u32 (!%p1204_p0), 127, %v701_v34 }
 0x13c   : > { %1278 = vmatpush3.bf16.msra.mxu1 (!%p1204_p0), %v1444_v32  ;;  %1439 = vset.pattern.permute.xlu1 (!%p1204_p0), %v1615_v51  ;;  %v749_v19 = vld [vmem:[#allocation4 + $0x8] sm:$0xff] (!%p1204_p0) }
 0x13d   : > { %1279 = vmatprep.subr.bf16.mxu1 (!%p1204_p0), %v1613_v22  ;;  %v703_v39 = vadd.s32 (!%p1204_p0), 8, %v702_v35  ;;  %v705_v40 = vadd.s32 (!%p1204_p0), %v704_v37, %v702_v35  ;;  %v710_v41 = vadd.s32 (!%p1204_p0), %v709_v38, %v708_v36  ;;  %1440 = vset.pattern.permute.xlu0 (!%p1204_p0), %v1615_v51 }
 0x13e   : > { %1272 = vmatpush3.bf16.msra.mxu0 (!%p1204_p0), %v1442_v23 }
 0x13f   : > { %1285 = vmatprep.subr.bf16.mxu0 (!%p1204_p0), %v1613_v22  ;;  %v706_v42 = vadd.s32 (!%p1204_p0), %v704_v37, %v703_v39  ;;  %vm711_vm8 = vcmp.ge.s32.totalorder (!%p1204_p0), %v705_v40, %v710_v41 }
 0x140   : > { %1280 = vmatpush3.bf16.msra.mxu1 %v1445_v33 }
 0x141   : > { %1274 = vmatmul.mubr.msk.bf16.vlgmr.msra.gmra.mrb[0].mxu0 %vm547_vm6, %v1443_v24  ;;  %1291 = vmatprep.subr.bf16.mxu1 %v1613_v22  ;;  %vm712_vm10 = vcmp.ge.s32.totalorder %v706_v42, %v710_v41 }
 0x142   : > { %1287 = vmatprep.mubr.msk.bf16.mxu0 %vm1614_vm5, %v1613_v22 }
 0x143   : > { %1282 = vmatmul.mubr.msk.bf16.vlgmr.msra.gmra.mrb[0].mxu1 %vm547_vm6, %v1443_v24  ;;  %v763_v24 = vld [vmem:[#allocation5] sm:$0xff] }
 0x144   : > { %1293 = vmatprep.mubr.msk.bf16.mxu1 %vm1614_vm5, %v1613_v22 }
 0x214   : > { %v585_v25 = vpop.f32.mrb[0].mxu0 }
 0x215   : > { %v1275_v26 = vpop.f32.mrb[1].mxu0 }
 0x216   : > { %v588_v27 = vpop.f32.mrb[2].mxu0  ;;  %v644_v60 = vpop.f32.mrb[0].mxu1  ;;  %v764_v26 = vld [vmem:[#allocation5 + $0x8] sm:$0xff] }
 0x217   : > { %v592_v28 = vpack.c.bf16 %v588_v27, %v585_v25  ;;  %v1276_v29 = vpop.f32.mrb[3].mxu0  ;;  %v1283_v61 = vpop.f32.mrb[1].mxu1 }
 0x218   : > { %v647_v62 = vpop.f32.mrb[2].mxu1 }
 0x219   : > { %v658_v30 = vsel %vm653_vm7, %v592_v28, 0  ;;  %v651_v63 = vpack.c.bf16 %v647_v62, %v644_v60  ;;  %v1284_v0 = vpop.f32.mrb[3].mxu1 }
 0x21a   : > { %1286 = vmatpush3.bf16.xpose.msra.mxu0 %v658_v30 }
 0x21b   : > { %1292 = vmatpush3.bf16.msra.mxu1 %v651_v63 }
 0x221   : > { %1288 = vmatmul.mubr.msk.bf16.vlgmr.msra.gmra.mrb[4].mxu0 %vm653_vm7, %v652_v31 }
 0x2f4   : > { %v694_v43 = vpop.f32.mrb[4].mxu0 }
 0x2f5   : > { %v713_v44 = vsel %vm711_vm8, %v694_v43, -1e+30  ;;  %v1289_v45 = vpop.f32.mrb[5].mxu0 }
 0x2f6   : > { %v697_v46 = vpop.f32.mrb[6].mxu0  ;;  %v718_v47 = vsel %vm717_vm9, %v713_v44, -inf }
 0x2f7   : > { %v714_v48 = vsel %vm712_vm10, %v697_v46, -1e+30  ;;  %719 = vmax.xlane.f32.xlu0 %v718_v47  ;;  %v1290_v49 = vpop.f32.mrb[7].mxu0 }
 0x2f8   : > { %v721_v50 = vsel %vm717_vm9, %v714_v48, -inf }
 0x2fb   : > { %722 = vmax.xlane.f32.xlu0 %v721_v50 }
 0x384   : > { %v720_v53 = vpop.xlane.xlu0 %719 }
 0x385   : > { %v724_v54 = vmax.f32 %v715_v52, %v720_v53 }
 0x387   : > { %v726_v56 = vsub.f32 %v715_v52, %v724_v54  ;;  %826 = vst.msk [vmem:[#allocation3] sm:$0xff] %vm760_vm11, %v724_v54  ;;  %734 = vperm.xlu1 %1439, %v724_v54  }
 0x388   : > { %v723_v57 = vpop.xlane.xlu0 %722 }
 0x389   : > { %v725_v58 = vmax.f32 %v716_v55, %v723_v57  ;;  %v728_v13 = vmul.f32 1.442695, %v726_v56 }
 0x38b   : > { %v727_v59 = vsub.f32 %v716_v55, %v725_v58  ;;  %827 = vst.msk [vmem:[#allocation3 + $0x8] sm:$0xff] %vm760_vm11, %v725_v58  ;;  %739 = vperm.xlu1 %1439, %v725_v58  }
 0x38d   : > { %v730_v12 = vmul.f32 1.442695, %v727_v59 }
 0x406   : > { %v735_v1 = vpop.permute.xlu1 %734 }
 0x407   : > { %v742_v2 = vsub.f32 %v713_v44, %v735_v1 }
 0x409   : > { %v744_v3 = vmul.f32 1.442695, %v742_v2 }
 0x40a   : > { %v740_v4 = vpop.permute.xlu1 %739 }
 0x40b   : > { %1446 = vpow2.f32 %v744_v3  ;;  %v743_v5 = vsub.f32 %v714_v48, %v740_v4 }
 0x40d   : > { %v746_v6 = vmul.f32 1.442695, %v743_v5 }
 0x40f   : > { %1448 = vpow2.f32 %v746_v6 }
 0x410   : > { %1450 = vpow2.f32 %v730_v12 }
 0x411   : > { %1452 = vpow2.f32 %v728_v13 }
 0x415   : > { %v1447_v7 = vpop.eup %1446 }
 0x416   : > { %v752_v8 = vsel %vm717_vm9, %v1447_v7, 0.0 }
 0x417   : > { %753 = vadd.xlane.f32.xlu0 %v752_v8 }
 0x419   : > { %v1449_v9 = vpop.eup %1448 }
 0x41a   : > { %v755_v10 = vsel %vm717_vm9, %v1449_v9, 0.0  ;;  %v777_v11 = vpack.c.bf16 %v1449_v9, %v1447_v7  ;;  %v1451_v14 = vpop.eup %1450 }
 0x41b   : > { %756 = vadd.xlane.f32.xlu1 %v755_v10  ;;  %v1453_v15 = vpop.eup %1452  ;;  %v751_v21 = vmul.f32 %v1451_v14, %v749_v19 }
 0x41c   : > { %1294 = vmatmul.mubr.msk.bf16.vlgmr.msra.gmra.mrb[4].mxu1 %vm717_vm9, %v777_v11  ;;  %v750_v17 = vmul.f32 %v1453_v15, %v748_v16 }
 0x42c   : > { %772 = vperm.xlu1 %1439, %v1451_v14  }
 0x42d   : > { %767 = vperm.xlu0 %1440, %v1453_v15  }
 0x4a4   : > { %v754_v18 = vpop.xlane.xlu0 %753 }
 0x4a5   : > { %v758_v20 = vadd.f32 %v754_v18, %v750_v17 }
 0x4a7   : > { %761 = vst.msk [vmem:[#allocation4] sm:$0xff] %vm760_vm11, %v758_v20 }
 0x4a8   : > { %v757_v22 = vpop.xlane.xlu1 %756 }
 0x4a9   : > { %v759_v23 = vadd.f32 %v757_v22, %v751_v21 }
 0x4ab   : > { %762 = vst.msk [vmem:[#allocation4 + $0x8] sm:$0xff] %vm760_vm11, %v759_v23 }
 0x4ac   : > { %v768_v25 = vpop.permute.xlu0 %767  ;;  %v773_v27 = vpop.permute.xlu1 %772 }
 0x4ad   : > { %v775_v28 = vmul.f32 %v768_v25, %v763_v24  ;;  %v776_v30 = vmul.f32 %v773_v27, %v764_v26 }
 0x4ef   : > { %v815_v29 = vpop.f32.mrb[4].mxu1 }
 0x4f0   : > { %v822_v31 = vadd.f32 %v815_v29, %v775_v28  ;;  %v1295_v32 = vpop.f32.mrb[5].mxu1 }
 0x4f1   : > { %v818_v33 = vpop.f32.mrb[6].mxu1 }
 0x4f2   : > { %824 = vst.msk [vmem:[#allocation5] sm:$0xff] %vm653_vm7, %v822_v31  ;;  %v823_v34 = vadd.f32 %v818_v33, %v776_v30  ;;  %v1296_v35 = vpop.f32.mrb[7].mxu1 }
 0x4f4   : > { %825 = vst.msk [vmem:[#allocation5 + $0x8] sm:$0xff] %vm653_vm7, %v823_v34 }
 0x4f5 PF: > { %p828_p1 = scmp.eq.s32.totalorder %s1575_s20, 1  ;;  %p1222_p2 = scmp.ne.s32.totalorder %s1575_s20, 1 }
 0x4f6   : > { %v832_v36 = vld [vmem:[#allocation4] sm:$0xff] (!%p1222_p2)  ;;  %v833_v37 = vld [vmem:[#allocation4 + $0x8] sm:$0xff] (!%p1222_p2)  ;;  %v1616_v38 = vmov (!%p1222_p2), 0   ;;  %v1617_v39 = vmov (!%p1222_p2), 0.0   ;;  %vm868_vm12 = vcmask (!%p1222_p2), 64512   ;;  %vm1618_vm13 = vmmov (!%p1222_p2), 0  }
 0x4f7   : > { %831 = sbr.rel (%p1222_p2) target bundleno = 1635 (0x663), region = 89  ;;  %1454 = vset.pattern.permute.xlu0 (!%p1222_p2), %v1616_v38  ;;  %1457 = vrcp.f32 (!%p1222_p2), %v832_v36  ;;  %1297 = vmatprep.subr.bf16.mxu0 (!%p1222_p2), %v1617_v39  ;;  %v1455_v40 = vld [vmem:[%s1806_s9 + $0x30] sm:$0xff] (!%p1222_p2)   ;;  %v1456_v42 = vld [vmem:[%s1806_s9 + $0x38] sm:$0xff] (!%p1222_p2)   ;;  %vm921_vm14 = vcmask (!%p1222_p2), 261120  }
 0x4f8   : > { %1459 = vrcp.f32 (!%p1222_p2), %v833_v37  ;;  %v873_v41 = vsel (!%p1222_p2), %vm868_vm12, %v1455_v40, 0  ;;  %v876_v44 = vsel (!%p1222_p2), %vm868_vm12, %v1456_v42, 0  ;;  %1301 = vmatprep.mubr.msk.bf16.mxu0 (!%p1222_p2), %vm1618_vm13, %v1617_v39  ;;  %v851_v53 = vld [vmem:[#allocation6] sm:$0xff] (!%p1222_p2)  ;;  %v852_v55 = vld [vmem:[#allocation6 + $0x8] sm:$0xff] (!%p1222_p2) }
 0x4f9   : > { %1298 = vmatpush3.bf16.xpose.msra.mxu0 (!%p1222_p2), %v873_v41  ;;  %v836_v47 = vld [vmem:[#allocation5] sm:$0xff] (!%p1222_p2) }
 0x4fa   : > { %1299 = vmatprep.subr.bf16.mxu0 (!%p1222_p2), %v1617_v39 }
 0x4fb   : > { %v837_v48 = vld [vmem:[#allocation5 + $0x8] sm:$0xff] (!%p1222_p2) }
 0x501   : > { %v1458_v43 = vpop.eup %1457  ;;  %1300 = vmatpush3.bf16.xpose.msra.mxu0 %v876_v44 }
 0x502   : > { %840 = vperm.xlu0 %1454, %v1458_v43   ;;  %v1460_v45 = vpop.eup %1459 }
 0x506   : > { %845 = vperm.xlu0 %1454, %v1460_v45  }
 0x581   : > { %v841_v46 = vpop.permute.xlu0 %840 }
 0x582   : > { %v848_v50 = vmul.f32 %v841_v46, %v836_v47 }
 0x585   : > { %v846_v49 = vpop.permute.xlu0 %845 }
 0x586   : > { %v849_v51 = vmul.f32 %v846_v49, %v837_v48 }
 0x588   : > { %v850_v52 = vpack.c.bf16 %v849_v51, %v848_v50 }
 0x58a   : > { %1302 = vmatmul.mubr.msk.bf16.vlgmr.msra.gmra.mrb[0].mxu0 %vm868_vm12, %v850_v52 }
 0x65d   : > { %v912_v54 = vpop.f32.mrb[0].mxu0 }
 0x65e   : > { %v919_v56 = vadd.f32 %v912_v54, %v851_v53  ;;  %v1303_v57 = vpop.f32.mrb[1].mxu0 }
 0x65f   : > { %v915_v58 = vpop.f32.mrb[2].mxu0 }
 0x660   : > { %922 = vst.msk [vmem:[#allocation6] sm:$0xff] %vm921_vm14, %v919_v56  ;;  %v920_v59 = vadd.f32 %v915_v58, %v852_v55  ;;  %v1304_v60 = vpop.f32.mrb[3].mxu0 }
 0x662   : > { %923 = vst.msk [vmem:[#allocation6 + $0x8] sm:$0xff] %vm921_vm14, %v920_v59 }
 0x663 PF: > { %p924_p3 = scmp.eq.s32.totalorder %s1579_s21, 3 }
 0x665   : > { %p925_p4 = pnand %p924_p3, %p828_p1 }
 0x666   : > { %v1242_v61 = vld [vmem:[%s1793_s6] sm:$0xff] (!%p925_p4)   ;;  %vm948_vm15 = vcmask (!%p925_p4), 261120   ;;  %vm939_vm0 = vcmask (!%p925_p4), 257024   ;;  %vm979_vm1 = vcmask (!%p925_p4), 7168  }
 0x667   : > { %928 = sbr.rel (%p925_p4) target bundleno = 1808 (0x710), region = 93  ;;  %v929_v62 = vld [vmem:[#allocation6] sm:$0xff] (!%p925_p4)  ;;  %v1243_v0 = vunpack.c.l.bf16 (!%p925_p4), %v1242_v61  ;;  %v1244_v3 = vunpack.c.h.bf16 (!%p925_p4), %v1242_v61 }
 0x668   : > { %v963_v1 = vmul.f32 (!%p925_p4), %v929_v62, %v929_v62  ;;  %v1239_v2 = vpack.c.bf16 (!%p925_p4), %v929_v62, %v929_v62 }
 0x669   : > { %v930_v63 = vld [vmem:[#allocation6 + $0x8] sm:$0xff] (!%p925_p4)  ;;  %v955_v6 = vmul.f32 (!%p925_p4), %v1243_v0, %v1243_v0  ;;  %v956_v8 = vmul.f32 (!%p925_p4), %v1244_v3, %v1244_v3  ;;  %v946_v13 = vmul.f32 (!%p925_p4), %v1243_v0, %v929_v62 }
 0x66a   : > { %v1240_v4 = vpack.c.bf16 (!%p925_p4), %v930_v63, %v930_v63  ;;  %v964_v5 = vmul.f32 (!%p925_p4), %v930_v63, %v930_v63  ;;  %v965_v7 = vsel (!%p925_p4), %vm948_vm15, %v963_v1, 0.0  ;;  %940 = vst.msk [vmem:[%s1808_s2] sm:$0xf] (!%p925_p4), %vm939_vm0, %v1239_v2  ;;  %v947_v11 = vmul.f32 (!%p925_p4), %v1244_v3, %v930_v63 }
 0x66b   : > { %966 = vadd.xlane.f32.xlu1 (!%p925_p4), %v965_v7  ;;  %v957_v9 = vsel (!%p925_p4), %vm948_vm15, %v955_v6, 0.0  ;;  %v960_v12 = vsel (!%p925_p4), %vm948_vm15, %v956_v8, 0.0  ;;  %v949_v15 = vsel (!%p925_p4), %vm948_vm15, %v946_v13, 0.0 }
 0x66c   : > { %941 = vst.msk [vmem:[%s1808_s2 + $0x4] sm:$0xf] (!%p925_p4), %vm939_vm0, %v1240_v4  ;;  %v968_v10 = vsel (!%p925_p4), %vm948_vm15, %v964_v5, 0.0  ;;  %958 = vadd.xlane.f32.xlu0 (!%p925_p4), %v957_v9  ;;  %v952_v14 = vsel (!%p925_p4), %vm948_vm15, %v947_v11, 0.0 }
 0x66f   : > { %969 = vadd.xlane.f32.xlu1 %v968_v10 }
 0x670   : > { %961 = vadd.xlane.f32.xlu0 %v960_v12 }
 0x673   : > { %953 = vadd.xlane.f32.xlu1 %v952_v14 }
 0x674   : > { %950 = vadd.xlane.f32.xlu0 %v949_v15 }
 0x6f8   : > { %v967_v16 = vpop.xlane.xlu1 %966 }
 0x6f9   : > { %v959_v17 = vpop.xlane.xlu0 %958 }
 0x6fa   : > { %v971_v18 = vmul.f32 %v967_v16, %v959_v17 }
 0x6fc   : > { %v970_v19 = vpop.xlane.xlu1 %969  ;;  %v973_v20 = vmax.f32 %v971_v18, 1e-16 }
 0x6fd   : > { %v962_v21 = vpop.xlane.xlu0 %961 }
 0x6fe   : > { %1461 = vrsqrt.f32 %v973_v20  ;;  %v972_v22 = vmul.f32 %v970_v19, %v962_v21 }
 0x700   : > { %v974_v23 = vmax.f32 %v972_v22, 1e-16  ;;  %v954_v27 = vpop.xlane.xlu1 %953 }
 0x701   : > { %v951_v24 = vpop.xlane.xlu0 %950 }
 0x702   : > { %1463 = vrsqrt.f32 %v974_v23 }
 0x708   : > { %v1462_v25 = vpop.eup %1461 }
 0x709   : > { %v977_v26 = vmul.f32 %v1462_v25, %v951_v24 }
 0x70b   : > { %980 = vst.msk [vmem:[%s1798_s19] sm:$0xff] %vm979_vm1, %v977_v26 }
 0x70c   : > { %v1464_v28 = vpop.eup %1463 }
 0x70d   : > { %v978_v29 = vmul.f32 %v1464_v28, %v954_v27 }
 0x70f   : > { %981 = vst.msk [vmem:[%s1798_s19 + $0x8] sm:$0xff] %vm979_vm1, %v978_v29 }
 0x710 PF: > { %s1234_s20 = sshll.u32 %s1587_s23, 2  ;;  %s1007_s22 = sshll.u32 %s1808_s2, 4  ;;  %s1872_s22 = int_to_ptr.vmem [resolvable:$true] %s1007_s22 }
 0x711   : > { %s1004_s21 = sadd.s32 %s1234_s20, %s1782_s10  ;;  %s1991_s19 = sand.u32 1, %s1559_s16  }
 0x712   : > { %s1235_s27 = sshll.u32 %s1004_s21, 6  ;;  %s1881_s8 = scalar_lea.sflag [#allocation9], %s1991_s19 }
 0x713   : > { %s1877_s7 = scalar_lea.hbm %s1960_s3, %s1235_s27  ;;  %s1465_s13 = scalar_lea.vmem %s1872_s22, 128 }
 0x714   : > { %p1466_p5 = scmp.ne.s32.totalorder %s1872_s22, %s1465_s13  ;;  %s1619_s23 = smov [#allocation8]  }
 0x715   : > { %s1469_s10 = sshll.u32 %s1619_s23, 4  ;;  %s1470_s10 = int_to_ptr.vmem [resolvable:$false] %s1469_s10 }
 0x716   : > { %p1467_p6 = pnand %p1466_p5, %p1741_p9  ;;  %s1471_s30 = scalar_lea.vmem %s1470_s10, 256 }
 0x717   : > { %p1472_p8 = scmp.lt.s32.totalorder %s1872_s22, %s1470_s10  ;;  %p1473_p10 = scmp.lt.s32.totalorder %s1471_s30, %s1465_s13 }
 0x718   : > { %p1468_p7 = pneg %p1467_p6 }
 0x719   : > { %p1474_p11 = por %p1473_p10, %p1472_p8 }
 0x71b   : > { %p1475_p12 = pnand %p1474_p11, %p1468_p7 }
 0x71d   : > { %1478 = shalt.err (!%p1475_p12)
}
 0x71e   : > { %s1479_s5 = scalar_lea.hbm %s1877_s7, 128  ;;  %s1483_s14 = scalar_lea.hbm %s1960_s3, 512 }
 0x71f   : > { %p1480_p0 = scmp.ne.s32.totalorder %s1877_s7, %s1479_s5  ;;  %p1484_p3 = scmp.lt.u32.totalorder %s1877_s7, %s1960_s3 }
 0x720   : > { %p1485_p4 = scmp.lt.u32.totalorder %s1483_s14, %s1479_s5  ;;  %p1487_p6 = scmp.lt.u32.totalorder %s1479_s5, %s1877_s7 }
 0x721   : > { %p1481_p1 = pnand %p1480_p0, %p1741_p9 }
 0x722   : > { %p1486_p5 = por %p1485_p4, %p1484_p3 }
 0x723   : > { %p1482_p2 = pneg %p1481_p1 }
 0x724   : > { %p1488_p7 = por %p1487_p6, %p1486_p5 }
 0x726   : > { %p1489_p8 = pnand %p1488_p7, %p1482_p2 }
 0x728   : > { %1492 = shalt.err (!%p1489_p8)
}
 0x729   : > { %s1620_s2 = smov 64   ;;  %s1621_s17 = smov 4  }
 0x72a   : > { %1305 = dma.vmem_to_hbm [thread:$0]  (%p1741_p9), %s1872_s22, 128, %s1877_s7, %s1881_s8, %s1620_s2, %s1620_s2, %s1621_s17  }
 0x72b PF: > { %p1311_p10 = scmp.ge.s32.totalorder %s1607_s28, 2  ;;  %s1026_s25 = sand.u32 1, %s1555_s15  }
 0x72c   : > { %s1027_s20 = scalar_lea.sflag [#allocation9], %s1026_s25 }
 0x72d   : > { %p1308_p11 = pnand %p1311_p10, %p1757_p13 }
 0x72f   : > { %1550 = dma.done.wait (!%p1308_p11), %s1027_s20, 128  }
 0x730   : > { %1552 = vsyncadd (!%p1308_p11), %s1027_s20, 4294967168  ;;  %s18_s28 = sadd.s32 1, %s1607_s28   ;;  %s1994_s12 = sld [smem:[#allocation11_spill]] }
 0x731   : > { %p1910_p12 = scmp.ge.s32.totalorder %s18_s28, 34   ;;  %s1995_s17 = sld [smem:[#allocation23_spill]] }
 0x732   : > { %s1996_s18 = sld [smem:[#allocation12_spill]]  ;;  %s1998_s20 = sld [smem:[#allocation13_spill]] }
 0x733   : > { %s1997_s19 = sld [smem:[#allocation20_spill]]  ;;  %s1999_s22 = sld [smem:[#allocation14_spill]] }
 0x734   : > { %s2000_s27 = sld [smem:[#allocation15_spill]]  ;;  %s2001_s23 = sld [smem:[#allocation16_spill]] }
 0x735   : > { %s2002_s24 = sld [smem:[#allocation17_spill]]  ;;  %s2003_s25 = sld [smem:[#allocation18_spill]] }
 0x736   : > { %s2004_s26 = sld [smem:[#allocation19_spill]]  ;;  %s2005_s29 = sld [smem:[#allocation21_spill]] }
 0x737   : > { %s2007_s15 = smov %s1559_s16  ;;  %s2008_s16 = smov %s1994_s12 }
 0x738   :  { %17 = sbr.rel (!%p1910_p12) target bundleno = 10 (0xa), region = 154 }
 0x739   : > { %s2009_s21 = smov %s1999_s22 }
 0x73a   : > { %s2010_s22 = smov %s2000_s27 }
 0x73c   : > { %s2011_s27 = smov %s2005_s29 }
 0x73f   :  { %1044 = vsyncpa [#allocation9], 1 }
 0x740   :  { %1046 = vsyncpa [#allocation9 + $0x1], 1 }

</bundles_post_ra>
